<compile_context>
chip_gen: v7x
topology: tpu7x:2x2x1
jax: 0.10.0
libtpu: 0.0.40
codegen_flags: <defaults>
</compile_context>

<pallas_src>
import functools

import jax
import jax.numpy as jnp
from jax import lax
from jax.experimental import pallas as pl
from jax.experimental.pallas import tpu as pltpu

NEG_SLOPE = 0.01        # torch.nn.LeakyReLU default
LANE = 128              # TPU lane width
SECTION_ALIGN = 32      # slab section row alignment (safe sublane-tile boundary for any dtype)


def _round_up(x, m):
    return (x + m - 1) // m * m


def _leaky_relu(x):
    return jnp.where(x > 0, x, NEG_SLOPE * x)


# -----------------------------------------------------------------------------
# Parameter packing: one [R, 128] slab, every section starting on a 32-row boundary.
#   "w1": W1^T (b1 folded into the deg block) + a 0.5 "ones" row  -> [d_aug, 16]-used
#   "w2": [W2; b2; 0]  so  pooled_aug @ sec == sum(a1) @ W2 + count * b2
#   "w3"/"w4": input rows zero-padded to 128 (no lane slicing needed in finalize)
#   "b3"/"b4": bias rows
# -----------------------------------------------------------------------------
def pack_params(params, *, deg_dim, dtype):
    w1, b1 = params["w1"].astype(jnp.float32), params["b1"].astype(jnp.float32)
    w2, b2 = params["w2"].astype(jnp.float32), params["b2"].astype(jnp.float32)
    w3, b3 = params["w3"].astype(jnp.float32), params["b3"].astype(jnp.float32)
    w4, b4 = params["w4"].astype(jnp.float32), params["b4"].astype(jnp.float32)

    d_in = w1.shape[0]                       # 16
    d_aug = _round_up(d_in + 1, 8)           # 24: 16 activation rows + 1 count row + pad

    # W1^T [out, in]; fold b1 into the degree block (each node has exactly one deg hit);
    # append a 0.5-filled row (each two-hot input column sums to 2 -> yields 1.0 per node).
    w1t = w1.T
    w1t = w1t.at[:, :deg_dim].add(b1.T)
    w1t_aug = jnp.concatenate(
        [w1t, jnp.full((1, d_in), 0.5, jnp.float32),
         jnp.zeros((d_aug - d_in - 1, d_in), jnp.float32)], axis=0)       # [d_aug, d_in]

    # [W2; b2; 0] so that (sum(a1), count, 0...) @ section == sum(a1)@W2 + count*b2.
    w2_aug = jnp.concatenate(
        [w2, b2, jnp.zeros((d_aug - w2.shape[0] - 1, w2.shape[1]), jnp.float32)], axis=0)

    def section(a, min_rows=0):
        rows = _round_up(max(a.shape[0], min_rows), SECTION_ALIGN)
        return jnp.pad(a, ((0, rows - a.shape[0]), (0, LANE - a.shape[1])))

    parts = (("w1", section(w1t_aug)),
             ("w2", section(w2_aug)),
             ("w3", section(w3, min_rows=LANE)),   # rows padded to 128
             ("b3", section(b3)),
             ("w4", section(w4, min_rows=LANE)),   # rows padded to 128
             ("b4", section(b4)))

    offs, blocks, off = {}, [], 0
    for name, blk in parts:
        offs[name] = off
        blocks.append(blk)
        off += blk.shape[0]
    slab = jnp.concatenate(blocks, axis=0).astype(dtype)                  # [R, 128]
    return slab, offs, d_aug


# -----------------------------------------------------------------------------
# Kernel: grid over node tiles; pooled [B_pad, d_aug] accumulator lives in VMEM.
# -----------------------------------------------------------------------------
def _simple_nn_kernel(idx_ref, params_ref, out_ref, pooled_ref, *,
                      deg_dim, d_in, d_aug, offs, matmul_dtype):
    i = pl.program_id(0)
    b_pad = pooled_ref.shape[0]
    tn = idx_ref.shape[1]
    md = matmul_dtype

    @pl.when(i == 0)
    def _init():
        pooled_ref[...] = jnp.zeros_like(pooled_ref)

    idx = idx_ref[...]                                      # [3, tn] int32
    deg, lab, seg = idx[0:1, :], idx[1:2, :], idx[2:3, :]   # [1, tn] each

    # OneHotEmbedding(deg) ++ OneHotEmbedding(lab), built transposed & lane-dense:
    # XT[j, n] = [j == deg[n]] + [j == deg_dim + lab[n]]   (two-hot column per node).
    f_iota = lax.broadcasted_iota(jnp.int32, (d_in, tn), 0)
    xt = jnp.where((f_iota == deg) | (f_iota == deg_dim + lab), 1.0, 0.0).astype(md)

    # gin_mlp: Linear(16,16) (b1 folded into packed weights) -> LeakyReLU (f32 on VPU).
    # Row d_in of the W1 section is the 0.5 "ones" row -> a1t[d_in, n] == 1 per real node.
    w1t = params_ref[offs["w1"]:offs["w1"] + d_aug, 0:d_in]                    # [d_aug, 16]
    h1t = jnp.dot(w1t.astype(md), xt, preferred_element_type=jnp.float32)      # [d_aug, tn]
    a1t = _leaky_relu(h1t)

    # global_add_pool as ONE MXU matmul (O(1) in num_graphs):
    # S[g, n] = [g == seg[n]];  pooled[g, d] += sum_n S[g, n] * a1t[d, n].
    g_iota = lax.broadcasted_iota(jnp.int32, (b_pad, tn), 0)
    s = jnp.where(g_iota == seg, 1.0, 0.0).astype(md)                          # [b_pad, tn]
    pooled_ref[...] += lax.dot_general(
        s, a1t.astype(md), dimension_numbers=(((1,), (1,)), ((), ())),
        preferred_element_type=jnp.float32)                                    # [b_pad, d_aug]

    # Second gin_mlp Linear + ClassifierHead run once, on the final node tile.
    @pl.when(i == pl.num_programs(0) - 1)
    def _finalize():
        pooled = pooled_ref[...].astype(md)                                    # [b_pad, d_aug]
        # Linear(16, 32): sum(a1) @ W2 + count * b2 via the packed [W2; b2] section.
        w2a = params_ref[offs["w2"]:offs["w2"] + d_aug, :]                     # [d_aug, 128]
        h2 = jnp.dot(pooled, w2a.astype(md), preferred_element_type=jnp.float32)
        # ClassifierHead: Linear -> LeakyReLU -> Linear (drop_out = 0 -> no Dropout).
        # W3/W4 input rows are zero-padded to 128, so no lane slicing is needed
        # (padded lanes of h2 / z are exact zeros).
        w3 = params_ref[offs["w3"]:offs["w3"] + LANE, :]
        b3 = params_ref[offs["b3"]:offs["b3"] + 1, :].astype(jnp.float32)
        z = _leaky_relu(jnp.dot(h2.astype(md), w3.astype(md),
                                preferred_element_type=jnp.float32) + b3)
        w4 = params_ref[offs["w4"]:offs["w4"] + LANE, :]
        b4 = params_ref[offs["b4"]:offs["b4"] + 1, :].astype(jnp.float32)
        out_ref[...] = jnp.dot(z.astype(md), w4.astype(md),
                               preferred_element_type=jnp.float32) + b4        # lane-dense store


# -----------------------------------------------------------------------------
# Wrapper
# -----------------------------------------------------------------------------
def simple_nn_baseline(node_deg, node_lab, batch_ids, params, *, num_graphs,
                       deg_dim, tile_n=2048, matmul_dtype=jnp.float32):
    """SimpleNNBaseline forward. node_deg/node_lab/batch_ids: int [N]; returns [B, C] f32.

    matmul_dtype=jnp.bfloat16 halves the resident weight slab and MXU operand widths
    (recommended on v6e/v7x); accumulation and elementwise math stay f32 (v5e-friendly).
    """
    n = int(node_deg.shape[0])
    d_in = params["w1"].shape[0]
    num_classes = params["w4"].shape[1]
    b_pad = _round_up(max(num_graphs, 1), 8)

    slab, offs, d_aug = pack_params(params, deg_dim=deg_dim, dtype=matmul_dtype)

    tn = min(_round_up(max(tile_n, LANE), LANE), _round_up(n, LANE))
    n_pad = _round_up(n, tn)

    def pad_row(a, fill):
        return jnp.pad(a.astype(jnp.int32), (0, n_pad - n), constant_values=fill)

    # Padded tail nodes get seg id == num_graphs: they pool either into row `num_graphs`
    # (< b_pad, sliced off below) or nowhere (if num_graphs == b_pad).
    idx = jnp.stack([pad_row(node_deg, 0),
                     pad_row(node_lab, 0),
                     pad_row(batch_ids, num_graphs)], axis=0)          # [3, n_pad] int32

    kernel = functools.partial(
        _simple_nn_kernel, deg_dim=deg_dim, d_in=d_in, d_aug=d_aug,
        offs=offs, matmul_dtype=matmul_dtype)

    out = pl.pallas_call(
        kernel,
        out_shape=jax.ShapeDtypeStruct((b_pad, LANE), jnp.float32),
        grid_spec=pltpu.PrefetchScalarGridSpec(
            num_scalar_prefetch=0,
            grid=(n_pad // tn,),
            in_specs=[
                pl.BlockSpec((3, tn), lambda i: (0, i)),       # lane-dense int32 indices
                pl.BlockSpec(slab.shape, lambda i: (0, 0)),    # resident packed params
            ],
            out_specs=pl.BlockSpec((b_pad, LANE), lambda i: (0, 0)),
            scratch_shapes=[pltpu.VMEM((b_pad, d_aug), jnp.float32)],  # pooled accumulator
        ),
        compiler_params=pltpu.CompilerParams(
            dimension_semantics=("arbitrary",),                # node axis is a reduction
            vmem_limit_bytes=32 * 1024 * 1024),
    )(idx, slab)
    return out[:num_graphs, :num_classes]


# -----------------------------------------------------------------------------
# Parameter init + pure-JAX reference
# -----------------------------------------------------------------------------
def init_params(key, dim_input, gin_dim, cls_hidden, num_classes):
    """Weights stored as [in, out] so y = x @ W + b matches torch's y = x @ W_t.T + b."""
    ks = jax.random.split(key, 4)

    def lin(k, fan_in, fan_out):
        bound = 1.0 / jnp.sqrt(fan_in)
        kw, kb = jax.random.split(k)
        w = jax.random.uniform(kw, (fan_in, fan_out), jnp.float32, -bound, bound)
        b = jax.random.uniform(kb, (1, fan_out), jnp.float32, -bound, bound)
        return w, b

    w1, b1 = lin(ks[0], dim_input, dim_input)     # mlp[0]: Linear(dim_input, dim_input)
    w2, b2 = lin(ks[1], dim_input, gin_dim)       # mlp[2]: Linear(dim_input, gin_dim)
    w3, b3 = lin(ks[2], gin_dim, cls_hidden)      # cls[0]: Linear(gin_dim, cls_hidden)
    w4, b4 = lin(ks[3], cls_hidden, num_classes)  # cls[-1]: Linear(cls_hidden, num_classes)
    return dict(w1=w1, b1=b1, w2=w2, b2=b2, w3=w3, b3=b3, w4=w4, b4=b4)


def reference_forward(node_deg, node_lab, batch_ids, params, *, num_graphs, deg_dim, lab_dim):
    hi = jax.lax.Precision.HIGHEST
    x = jnp.concatenate([jax.nn.one_hot(node_deg, deg_dim, dtype=jnp.float32),
                         jax.nn.one_hot(node_lab, lab_dim, dtype=jnp.float32)], axis=1)
    h = _leaky_relu(jnp.dot(x, params["w1"], precision=hi) + params["b1"])
    h = jnp.dot(h, params["w2"], precision=hi) + params["b2"]
    pooled = jax.ops.segment_sum(h, batch_ids, num_segments=num_graphs)     # global_add_pool
    z = _leaky_relu(jnp.dot(pooled, params["w3"], precision=hi) + params["b3"])
    return jnp.dot(z, params["w4"], precision=hi) + params["b4"]


if __name__ == "__main__":
    MAX_NODE_DEG = 7
    NUM_NODE_LAB = 8
    DEG_DIM = MAX_NODE_DEG + 1                    # 8
    DIM_INPUT = DEG_DIM + NUM_NODE_LAB            # 16
    GIN_DIM = 32
    CLS_HIDDEN = 32
    NUM_CLASSES = 4
    N_NODES = 300                                 # total nodes in the batch
    N_GRAPHS = 2

    key = jax.random.PRNGKey(0)
    k_deg, k_lab, k_batch, k_par = jax.random.split(key, 4)

    node_deg = jax.random.randint(k_deg, (N_NODES,), 0, MAX_NODE_DEG + 1)
    node_lab = jax.random.randint(k_lab, (N_NODES,), 0, NUM_NODE_LAB)
    batch_ids = jnp.sort(jax.random.randint(k_batch, (N_NODES,), 0, N_GRAPHS))

    params = init_params(k_par, DIM_INPUT, GIN_DIM, CLS_HIDDEN, NUM_CLASSES)

    ref = reference_forward(node_deg, node_lab, batch_ids, params,
                            num_graphs=N_GRAPHS, deg_dim=DEG_DIM, lab_dim=NUM_NODE_LAB)

    # Multi-tile path (tile_n=128 -> 3 node tiles): exercises accumulator init /
    # accumulate / finalize and the padded tail (seg id == N_GRAPHS -> sliced off).
    out = simple_nn_baseline(node_deg, node_lab, batch_ids, params,
                             num_graphs=N_GRAPHS, deg_dim=DEG_DIM, tile_n=128)
    out = jax.block_until_ready(out)
    assert out.shape == (N_GRAPHS, NUM_CLASSES)
    assert jnp.allclose(out, ref, atol=1e-3, rtol=1e-3), "f32 multi-tile mismatch vs reference"

    # Single-tile path (default large tile clipped to the padded node count).
    out1 = simple_nn_baseline(node_deg, node_lab, batch_ids, params,
                              num_graphs=N_GRAPHS, deg_dim=DEG_DIM)
    out1 = jax.block_until_ready(out1)
    assert jnp.allclose(out1, ref, atol=1e-3, rtol=1e-3), "f32 single-tile mismatch vs reference"

    # bf16 weight/matmul path (recommended on v6e/v7x); accumulation + elementwise stay f32.
    out_bf16 = simple_nn_baseline(node_deg, node_lab, batch_ids, params,
                                  num_graphs=N_GRAPHS, deg_dim=DEG_DIM, tile_n=128,
                                  matmul_dtype=jnp.bfloat16)
    out_bf16 = jax.block_until_ready(out_bf16)
    rel_err = float(jnp.max(jnp.abs(out_bf16 - ref)) / (jnp.max(jnp.abs(ref)) + 1e-6))
    assert rel_err < 5e-2, "bf16 kernel outside tolerance"

    print("KERNEL_OK")
</pallas_src>

<mosaic_0001>
module attributes {stable_mosaic.version = 11 : i64} {
  func.func @_simple_nn_kernel(%arg0: i32, %arg1: memref<3x128xi32, #tpu.memory_space<vmem>>, %arg2: memref<384x128xf32, #tpu.memory_space<vmem>>, %arg3: memref<8x128xf32, #tpu.memory_space<vmem>>, %arg4: memref<8x24xf32, #tpu.memory_space<vmem>>) attributes {dimension_semantics = [#tpu.dimension_semantics<arbitrary>], iteration_bounds = array<i64: 3>, scalar_prefetch = 0 : i64, scratch_operands = 1 : i64, tpu.core_type = #tpu.core_type<tc>, window_params = [{transform_indices = @transform_0, window_bounds = array<i64: 3, 128>}, {pipeline_mode = #tpu.pipeline_mode<synchronous>, transform_indices = @transform_1, window_bounds = array<i64: 384, 128>}, {pipeline_mode = #tpu.pipeline_mode<synchronous>, transform_indices = @transform_2, window_bounds = array<i64: 8, 128>}]} {
    %c0_i32 = arith.constant 0 : i32
    %0 = arith.cmpi eq, %arg0, %c0_i32 : i32
    %1 = arith.extui %0 : i1 to i32
    %c0_i32_0 = arith.constant 0 : i32
    %2 = arith.cmpi ne, %1, %c0_i32_0 : i32
    scf.if %2 {
      %cst_16 = arith.constant 0.000000e+00 : f32
      %38 = vector.broadcast %cst_16 : f32 to vector<8x24xf32>
      %c0_17 = arith.constant 0 : index
      %c0_18 = arith.constant 0 : index
      %39 = vector.load %arg4[%c0_17, %c0_18] : memref<8x24xf32, #tpu.memory_space<vmem>>, vector<8x24xf32>
      tpu.vector_store %arg4[%c0_17, %c0_18], %38 {strides = array<i32>} : memref<8x24xf32, #tpu.memory_space<vmem>>, vector<8x24xf32>,
    } else {
    }
    %c0 = arith.constant 0 : index
    %c0_1 = arith.constant 0 : index
    %3 = vector.load %arg1[%c0, %c0_1] : memref<3x128xi32, #tpu.memory_space<vmem>>, vector<3x128xi32>
    %4 = vector.extract_strided_slice %3 {offsets = [0, 0], sizes = [1, 128], strides = [1, 1]} : vector<3x128xi32> to vector<1x128xi32>
    %5 = vector.extract_strided_slice %3 {offsets = [1, 0], sizes = [1, 128], strides = [1, 1]} : vector<3x128xi32> to vector<1x128xi32>
    %6 = vector.extract_strided_slice %3 {offsets = [2, 0], sizes = [1, 128], strides = [1, 1]} : vector<3x128xi32> to vector<1x128xi32>
    %7 = tpu.iota {dimensions = array<i32: 0>} : vector<16x128xi32>
    %8 = vector.broadcast %4 : vector<1x128xi32> to vector<16x128xi32>
    %9 = arith.cmpi eq, %7, %8 : vector<16x128xi32>
    %c8_i32 = arith.constant 8 : i32
    %10 = vector.broadcast %c8_i32 : i32 to vector<1x128xi32>
    %11 = arith.addi %10, %5 : vector<1x128xi32>
    %12 = vector.broadcast %11 : vector<1x128xi32> to vector<16x128xi32>
    %13 = arith.cmpi eq, %7, %12 : vector<16x128xi32>
    %14 = arith.ori %9, %13 : vector<16x128xi1>
    %cst = arith.constant 1.000000e+00 : f32
    %cst_2 = arith.constant 0.000000e+00 : f32
    %15 = vector.broadcast %cst : f32 to vector<16x128xf32>
    %16 = vector.broadcast %cst_2 : f32 to vector<16x128xf32>
    %17 = arith.select %14, %15, %16 : vector<16x128xi1>, vector<16x128xf32>
    %c0_3 = arith.constant 0 : index
    %c0_4 = arith.constant 0 : index
    %18 = vector.load %arg2[%c0_3, %c0_4] : memref<384x128xf32, #tpu.memory_space<vmem>>, vector<24x16xf32>
    %cst_5 = arith.constant dense<0.000000e+00> : vector<24x128xf32>
    %19 = tpu.matmul %18, %17, %cst_5 {dimension_numbers = #tpu.dot_dimension_numbers<[1], [0], [0], [1], [0, 0, 1, 1], [], []>} : vector<24x16xf32>, vector<16x128xf32>, vector<24x128xf32> -> vector<24x128xf32>
    %cst_6 = arith.constant 0.000000e+00 : f32
    %20 = vector.broadcast %cst_6 : f32 to vector<24x128xf32>
    %21 = arith.cmpf ogt, %19, %20 : vector<24x128xf32>
    %cst_7 = arith.constant 0.00999999977 : f32
    %22 = vector.broadcast %cst_7 : f32 to vector<24x128xf32>
    %23 = arith.mulf %22, %19 : vector<24x128xf32>
    %24 = arith.select %21, %19, %23 : vector<24x128xi1>, vector<24x128xf32>
    %25 = tpu.iota {dimensions = array<i32: 0>} : vector<8x128xi32>
    %26 = vector.broadcast %6 : vector<1x128xi32> to vector<8x128xi32>
    %27 = arith.cmpi eq, %25, %26 : vector<8x128xi32>
    %cst_8 = arith.constant 1.000000e+00 : f32
    %cst_9 = arith.constant 0.000000e+00 : f32
    %28 = vector.broadcast %cst_8 : f32 to vector<8x128xf32>
    %29 = vector.broadcast %cst_9 : f32 to vector<8x128xf32>
    %30 = arith.select %27, %28, %29 : vector<8x128xi1>, vector<8x128xf32>
    %c0_10 = arith.constant 0 : index
    %c0_11 = arith.constant 0 : index
    %31 = vector.load %arg4[%c0_10, %c0_11] : memref<8x24xf32, #tpu.memory_space<vmem>>, vector<8x24xf32>
    %cst_12 = arith.constant dense<0.000000e+00> : vector<8x24xf32>
    %32 = tpu.matmul %30, %24, %cst_12 {dimension_numbers = #tpu.dot_dimension_numbers<[1], [1], [0], [0], [0, 0, 1, 0], [], []>} : vector<8x128xf32>, vector<24x128xf32>, vector<8x24xf32> -> vector<8x24xf32>
    %33 = arith.addf %31, %32 : vector<8x24xf32>
    %c0_13 = arith.constant 0 : index
    %c0_14 = arith.constant 0 : index
    %34 = vector.load %arg4[%c0_13, %c0_14] : memref<8x24xf32, #tpu.memory_space<vmem>>, vector<8x24xf32>
    tpu.vector_store %arg4[%c0_13, %c0_14], %33 {strides = array<i32>} : memref<8x24xf32, #tpu.memory_space<vmem>>, vector<8x24xf32>,
    %c2_i32 = arith.constant 2 : i32
    %35 = arith.cmpi eq, %arg0, %c2_i32 : i32
    %36 = arith.extui %35 : i1 to i32
    %c0_i32_15 = arith.constant 0 : i32
    %37 = arith.cmpi ne, %36, %c0_i32_15 : i32
    scf.if %37 {
      %c0_16 = arith.constant 0 : index
      %c0_17 = arith.constant 0 : index
      %38 = vector.load %arg4[%c0_16, %c0_17] : memref<8x24xf32, #tpu.memory_space<vmem>>, vector<8x24xf32>
      %c32 = arith.constant 32 : index
      %c0_18 = arith.constant 0 : index
      %39 = vector.load %arg2[%c32, %c0_18] : memref<384x128xf32, #tpu.memory_space<vmem>>, vector<24x128xf32>
      %cst_19 = arith.constant dense<0.000000e+00> : vector<8x128xf32>
      %40 = tpu.matmul %38, %39, %cst_19 {dimension_numbers = #tpu.dot_dimension_numbers<[1], [0], [0], [1], [0, 0, 1, 1], [], []>} : vector<8x24xf32>, vector<24x128xf32>, vector<8x128xf32> -> vector<8x128xf32>
      %c64 = arith.constant 64 : index
      %c0_20 = arith.constant 0 : index
      %41 = vector.load %arg2[%c64, %c0_20] : memref<384x128xf32, #tpu.memory_space<vmem>>, vector<128x128xf32>
      %c192 = arith.constant 192 : index
      %c0_21 = arith.constant 0 : index
      %42 = vector.load %arg2[%c192, %c0_21] : memref<384x128xf32, #tpu.memory_space<vmem>>, vector<1x128xf32>
      %cst_22 = arith.constant dense<0.000000e+00> : vector<8x128xf32>
      %43 = tpu.matmul %40, %41, %cst_22 {dimension_numbers = #tpu.dot_dimension_numbers<[1], [0], [0], [1], [0, 0, 1, 1], [], []>} : vector<8x128xf32>, vector<128x128xf32>, vector<8x128xf32> -> vector<8x128xf32>
      %44 = vector.broadcast %42 : vector<1x128xf32> to vector<8x128xf32>
      %45 = arith.addf %43, %44 : vector<8x128xf32>
      %cst_23 = arith.constant 0.000000e+00 : f32
      %46 = vector.broadcast %cst_23 : f32 to vector<8x128xf32>
      %47 = arith.cmpf ogt, %45, %46 : vector<8x128xf32>
      %cst_24 = arith.constant 0.00999999977 : f32
      %48 = vector.broadcast %cst_24 : f32 to vector<8x128xf32>
      %49 = arith.mulf %48, %45 : vector<8x128xf32>
      %50 = arith.select %47, %45, %49 : vector<8x128xi1>, vector<8x128xf32>
      %c224 = arith.constant 224 : index
      %c0_25 = arith.constant 0 : index
      %51 = vector.load %arg2[%c224, %c0_25] : memref<384x128xf32, #tpu.memory_space<vmem>>, vector<128x128xf32>
      %c352 = arith.constant 352 : index
      %c0_26 = arith.constant 0 : index
      %52 = vector.load %arg2[%c352, %c0_26] : memref<384x128xf32, #tpu.memory_space<vmem>>, vector<1x128xf32>
      %cst_27 = arith.constant dense<0.000000e+00> : vector<8x128xf32>
      %53 = tpu.matmul %50, %51, %cst_27 {dimension_numbers = #tpu.dot_dimension_numbers<[1], [0], [0], [1], [0, 0, 1, 1], [], []>} : vector<8x128xf32>, vector<128x128xf32>, vector<8x128xf32> -> vector<8x128xf32>
      %54 = vector.broadcast %52 : vector<1x128xf32> to vector<8x128xf32>
      %55 = arith.addf %53, %54 : vector<8x128xf32>
      %c0_28 = arith.constant 0 : index
      %c0_29 = arith.constant 0 : index
      %56 = vector.load %arg3[%c0_28, %c0_29] : memref<8x128xf32, #tpu.memory_space<vmem>>, vector<8x128xf32>
      tpu.vector_store %arg3[%c0_28, %c0_29], %55 {strides = array<i32>} : memref<8x128xf32, #tpu.memory_space<vmem>>, vector<8x128xf32>,
    } else {
    }
    return
  }
  func.func @transform_0(%arg0: i32) -> (i32, i32) {
    %c0_i32 = arith.constant 0 : i32
    %c0_i32_0 = arith.constant 0 : i32
    return %c0_i32, %arg0 : i32, i32
  }
  func.func @transform_1(%arg0: i32) -> (i32, i32) {
    %c0_i32 = arith.constant 0 : i32
    %c0_i32_0 = arith.constant 0 : i32
    %c0_i32_1 = arith.constant 0 : i32
    return %c0_i32, %c0_i32_0 : i32, i32
  }
  func.func @transform_2(%arg0: i32) -> (i32, i32) {
    %c0_i32 = arith.constant 0 : i32
    %c0_i32_0 = arith.constant 0 : i32
    %c0_i32_1 = arith.constant 0 : i32
    return %c0_i32, %c0_i32_0 : i32, i32
  }
}

</mosaic_0001>

<bundles_post_ra>
// kernel: tpu_custom_call.1
= control target key start
LH: loop header
LB: loop body
LE: loop exit
PB: predicated region body
PF: predicated region fallthrough
CT: control target
= control target key end

     0   :  { %7 = vsyncpa [#allocation4], 0  ;;  %s1346_s0 = inlined_call_operand.hbm [shape: s32[3,384], index: 0, kind: input, shape index: {}]   ;;  %s1347_s1 = inlined_call_operand.hbm [shape: f32[384,128], index: 1, kind: input, shape index: {}]   ;;  %s1348_s2 = inlined_call_operand.hbm [shape: f32[8,128], index: 2, kind: output, shape index: {}]  }
   0x1   :  { %9 = vsyncpa [#allocation4 + $0x1], 0 }
   0x2   :  { %10 = vsyncpa [#allocation7], 0 }
   0x3   :  { %11 = vsyncpa [#allocation5], 0  ;;  %s1159_s9 = smov 0   ;;  %s1161_s10 = smov 0  }
   0x4   :  { %s1163_s11 = smov 0   ;;  %s1165_s12 = smov 0  }
   0x5 LB: > { %s1178_s13 = sadd.s32 4294967295, %s1128_s12   ;;  %p37_p0 = scmp.ne.s32.totalorder %s1120_s10, %s1116_s9  ;;  %s1128_s12 = sphi %s1165_s12, %s1364_s12   ;;  %s1124_s11 = sphi %s1163_s11, %s1363_s11   ;;  %s1120_s10 = sphi %s1161_s10, %s1362_s10   ;;  %s1116_s9 = sphi %s1159_s9, %s1361_s9  }
   0x6   : > { %p1349_p1 = scmp.eq.s32.totalorder %s1178_s13, 0  ;;  %p706_p2 = scmp.ge.s32.totalorder %s1128_s12, 1 }
   0x7   : > { %p90_p3 = scmp.lt.s32.totalorder %s1128_s12, 4  ;;  %s1130_s16 = smov [#allocation6]  }
   0x8   : > { %p1187_p5 = por %p1349_p1, %p37_p0  ;;  %s102_s17 = sshll.u32 %s1130_s16, 4  ;;  %s103_s17 = int_to_ptr.vmem [resolvable:$true] %s102_s17 }
   0x9   : > { %p1191_p6 = pnand %p706_p2, %p90_p3  ;;  %s1204_s19 = sadd.s32 1, %s1128_s12  }
   0xa   : > { %s1352_s14 = scalar_select %p1187_p5, 1, 0 }
   0xb   : > { %s1353_s15 = scalar_select %p1191_p6, 1, 0 }
   0xc   : > { %p944_p7 = pneg %p1191_p6  ;;  %s24_s20 = sadd.s32 1, %s1124_s11 }
   0xd   : > { %s21_s21 = ssub.s32 %s1128_s12, %s1204_s19  ;;  %s1002_s24 = scalar_lea.hbm %s1347_s1, 6144 }
   0xe   : > { %p1199_p8 = pnand %p944_p7, %p1349_p1  ;;  %p1003_p9 = scmp.ne.s32.totalorder %s1347_s1, %s1002_s24 }
   0xf   : > { %p1009_p13 = scmp.lt.u32.totalorder %s1002_s24, %s1347_s1 }
  0x10   : > { %p1004_p10 = pneg %p1199_p8 }
  0x12   : > { %p1005_p11 = pnand %p1004_p10, %p1003_p9 }
  0x14   : > { %p1006_p12 = pneg %p1005_p11 }
  0x16   : > { %p1011_p0 = pnand %p1009_p13, %p1006_p12 }
  0x18   : > { %1014 = shalt.err (!%p1011_p0)
}
  0x19   : > { %s1015_s29 = scalar_lea.vmem %s103_s17, 6144  ;;  %p1023_p4 = scmp.lt.s32.totalorder %s103_s17, %s103_s17 }
  0x1a   : > { %p1016_p2 = scmp.ne.s32.totalorder %s103_s17, %s1015_s29  ;;  %p1024_p1 = scmp.lt.s32.totalorder %s1015_s29, %s1015_s29 }
  0x1c   : > { %p1018_p3 = pnand %p1016_p2, %p1004_p10  ;;  %p1025_p5 = por %p1024_p1, %p1023_p4 }
  0x1e   : > { %p1019_p7 = pneg %p1018_p3 }
  0x20   : > { %p1026_p6 = pnand %p1025_p5, %p1019_p7 }
  0x22   : > { %1029 = shalt.err (!%p1026_p6)
}
  0x23   : > { %s1131_s30 = smov 128   ;;  %s1132_s3 = smov 8  }
  0x24   : > { %947 = dma.hbm_to_vmem [thread:$0]  (!%p1199_p8), %s1347_s1, 6144, %s103_s17, [#allocation7], %s1131_s30, %s1131_s30, %s1132_s3  }
  0x25   : > { %p22_p9 = scmp.eq.s32.totalorder %s21_s21, 0  ;;  %p31_p10 = scmp.ne.s32.totalorder %s1124_s11, %s1120_s10 }
  0x26   : > { %p32_p1 = scmp.eq.s32.totalorder %s1128_s12, 0  ;;  %p953_p4 = scmp.lt.s32.totalorder %s1128_s12, 3 }
  0x27   : > { %s1230_s6 = scalar_select %p22_p9, %s1124_s11, %s24_s20  }
  0x28   : > { %p33_p5 = por %p32_p1, %p31_p10  ;;  %s116_s7 = sand.u32 1, %s1124_s11  }
  0x29   : > { %s709_s8 = sshll.u32 %s116_s7, 2  ;;  %s710_s9 = sshll.u32 %s1128_s12, 6 }
  0x2a   : > { %s1237_s23 = scalar_lea.hbm %s1346_s0, %s710_s9  ;;  %s120_s17 = scalar_lea.vmem [#allocation3], %s709_s8 }
  0x2b   : > { %s127_s18 = sshll.u32 %s120_s17, 4  ;;  %p1241_p6 = pnand %p953_p4, %p33_p5  ;;  %s1239_s18 = int_to_ptr.vmem [resolvable:$true] %s127_s18 }
  0x2c   : > { %s117_s12 = scalar_lea.sflag [#allocation4], %s116_s7  ;;  %s1030_s21 = scalar_lea.hbm %s1237_s23, 64 }
  0x2d   : > { %p1031_p8 = scmp.ne.s32.totalorder %s1237_s23, %s1030_s21  ;;  %p1032_p11 = pneg %p1241_p6 }
  0x2e   : > { %s1035_s26 = scalar_lea.hbm %s1346_s0, 192  ;;  %p1036_p0 = scmp.lt.u32.totalorder %s1237_s23, %s1346_s0 }
  0x2f   : > { %p1033_p12 = pnand %p1032_p11, %p1031_p8  ;;  %p1037_p2 = scmp.lt.u32.totalorder %s1035_s26, %s1030_s21 }
  0x30   : > { %p1039_p7 = scmp.lt.u32.totalorder %s1030_s21, %s1237_s23 }
  0x31   : > { %p1034_p13 = pneg %p1033_p12  ;;  %p1038_p3 = por %p1037_p2, %p1036_p0 }
  0x33   : > { %p1040_p9 = por %p1039_p7, %p1038_p3 }
  0x35   : > { %p1041_p10 = pnand %p1040_p9, %p1034_p13 }
  0x37   : > { %1044 = shalt.err (!%p1041_p10)
}
  0x38   : > { %s1045_s29 = scalar_lea.vmem %s1239_s18, 64  ;;  %s1133_s30 = smov [#allocation3]  }
  0x39   : > { %p1046_p1 = scmp.ne.s32.totalorder %s1239_s18, %s1045_s29  ;;  %s1050_s3 = sshll.u32 %s1133_s30, 4  ;;  %s1051_s3 = int_to_ptr.vmem [resolvable:$false] %s1050_s3 }
  0x3a   : > { %s1052_s4 = scalar_lea.vmem %s1051_s3, 128  ;;  %p1053_p8 = scmp.lt.s32.totalorder %s1239_s18, %s1051_s3 }
  0x3b   : > { %p1048_p4 = pnand %p1046_p1, %p1032_p11  ;;  %p1054_p12 = scmp.lt.s32.totalorder %s1052_s4, %s1045_s29 }
  0x3d   : > { %p1049_p5 = pneg %p1048_p4  ;;  %p1055_p0 = por %p1054_p12, %p1053_p8 }
  0x3f   : > { %p1056_p2 = pnand %p1055_p0, %p1049_p5 }
  0x41   : > { %1059 = shalt.err (!%p1056_p2)
}
  0x42   : > { %951 = dma.hbm_to_vmem [thread:$0]  (!%p1241_p6), %s1237_s23, 64, %s1239_s18, %s117_s12  }
  0x43   : > { %p1356_p13 = scmp.ne.s32.totalorder %s1353_s15, 0 }
  0x44   : > { %s138_s5 = sand.u32 (!%p1356_p13), 1, %s1120_s10   ;;  %p1357_p11 = scmp.ne.s32.totalorder (!%p1356_p13), %s1352_s14, 0 }
  0x45   : > { %136 = sbr.rel (%p1356_p13) target bundleno = 1227 (0x4cb), region = 28  ;;  %s712_s7 = sshll.u32 (!%p1356_p13), %s138_s5, 2 }
  0x46   : > { %s139_s8 = scalar_lea.sflag (!%p1356_p13), [#allocation4], %s138_s5  ;;  %s142_s9 = scalar_lea.vmem (!%p1356_p13), [#allocation3], %s712_s7 }
  0x4c   : > { %1103 = dma.done.wait (%p1357_p11), %s139_s8, 64  }
  0x4d   : > { %1105 = vsyncadd (%p1357_p11), %s139_s8, 4294967232  ;;  %p1358_p3 = scmp.eq.s32.totalorder %s1178_s13, 0 }
  0x4f   : > { %1107 = dma.done.wait (%p1358_p3), [#allocation7], 6144   ;;  %p1359_p7 = pmov %p1358_p3 }
  0x50   : > { %p1360_p6 = scmp.ne.s32.totalorder %s1178_s13, 0 }
  0x51   : > { %1109 = vsyncadd (%p1359_p7), [#allocation7], 4294961152  ;;  %vm166_vm0 = vcmask (!%p1360_p6), 195584   ;;  %v1134_v0 = vmov (!%p1360_p6), 0.0  }
  0x52   : > { %165 = sbr.rel (%p1360_p6) target bundleno = 89 (0x59), region = 40  ;;  %167 = vst.msk [vmem:[#allocation2] sm:$0xff] (!%p1360_p6), %vm166_vm0, %v1134_v0 }
  0x59 PF: > { %v168_v1 = vld [vmem:[%s142_s9] sm:$0x7]  ;;  %v169_v2 = vlaneseq  ;;  %v1135_v3 = vmov 0.0|0.0   ;;  %vm1136_vm1 = vmmov 0   ;;  %v1137_v6 = vmov 0.0   ;;  %v189_v13 = vld [vmem:[#allocation6] sm:$0xff] }
  0x5a   : > { %877 = vmatprep.subr.bf16.mxu0 %v1135_v3  ;;  %880 = vmatprep.subr.bf16.mxu1 %v1135_v3  ;;  %v178_v5 = vadd.s32 8, %v168_v1  ;;  %v1138_v12 = vmov 1.0|1.0   ;;  %vm192_vm9 = vcmask 130048   ;;  %v190_v14 = vld [vmem:[#allocation6 + $0x8] sm:$0xff]  ;;  %v191_v15 = vld [vmem:[#allocation6 + $0x10] sm:$0xff] }
  0x5b   : > { %v170_v4 = vshrl.u32 %v169_v2, 7  ;;  %780 = vmatprep.mubr.msk.f32.mxu0 %vm1136_vm1, %v1137_v6  ;;  %795 = vmatprep.mubr.msk.f32.mxu1 %vm1136_vm1, %v1137_v6  ;;  %v1139_v31 = vmov 1.0   ;;  %v297_v32 = vld [vmem:[#allocation2] sm:$0xff]  ;;  %vm369_vm14 = vcmask 195584   ;;  %p721_p9 = scmp.ne.s32.totalorder %s1178_s13, 2 }
  0x5c   : > { %v376_v36 = vld [vmem:[#allocation6 + $0x20] sm:$0xff] (!%p721_p9)  ;;  %v377_v37 = vld [vmem:[#allocation6 + $0x28] sm:$0xff] (!%p721_p9)  ;;  %v1140_v38 = vmov (!%p721_p9), 0.0|0.0   ;;  %vm1141_vm15 = vmmov (!%p721_p9), 0   ;;  %v1142_v40 = vmov (!%p721_p9), 0.0   ;;  %v454_v44 = vld [vmem:[#allocation6 + $0x50] sm:$0xff] (!%p721_p9) }
  0x5d   : > { %v171_v7 = vadd.s32 8, %v170_v4  ;;  %v174_v8 = vsub.s32 0, %v170_v4  ;;  %v181_v9 = vsub.s32 1, %v170_v4  ;;  %v293_v27 = vsub.s32 2, %v170_v4  ;;  %v452_v41 = vld [vmem:[#allocation6 + $0x40] sm:$0xff] (!%p721_p9)  ;;  %v453_v42 = vld [vmem:[#allocation6 + $0x48] sm:$0xff] (!%p721_p9) }
  0x5e   : > { %v884_v39 = vpack.c.bf16 (!%p721_p9), %v377_v37, %v376_v36  ;;  %v887_v43 = vpack.c.bf16 (!%p721_p9), %v453_v42, %v452_v41  ;;  %v455_v45 = vld [vmem:[#allocation6 + $0x58] sm:$0xff] (!%p721_p9)  ;;  %v378_v46 = vld [vmem:[#allocation6 + $0x30] sm:$0xff] (!%p721_p9)  ;;  %v456_v49 = vld [vmem:[#allocation6 + $0x60] sm:$0xff] (!%p721_p9) }
  0x5f   : > { %v175_v10 = vrot.slane %v168_v1, %v174_v8  ;;  %v182_v11 = vrot.slane %v178_v5, %v181_v9  ;;  %v294_v29 = vrot.slane %v168_v1, %v293_v27  ;;  %v890_v47 = vpack.c.bf16 (!%p721_p9), %v455_v45, %v454_v44  ;;  %v457_v50 = vld [vmem:[#allocation6 + $0x68] sm:$0xff] (!%p721_p9)  ;;  %v458_v52 = vld [vmem:[#allocation6 + $0x70] sm:$0xff] (!%p721_p9)  ;;  %v459_v53 = vld [vmem:[#allocation6 + $0x78] sm:$0xff] (!%p721_p9) }
  0x60   : > { %v893_v51 = vpack.c.bf16 (!%p721_p9), %v457_v50, %v456_v49  ;;  %v896_v54 = vpack.c.bf16 (!%p721_p9), %v459_v53, %v458_v52  ;;  %v460_v55 = vld [vmem:[#allocation6 + $0x80] sm:$0xff] (!%p721_p9)  ;;  %v461_v56 = vld [vmem:[#allocation6 + $0x88] sm:$0xff] (!%p721_p9)  ;;  %v462_v58 = vld [vmem:[#allocation6 + $0x90] sm:$0xff] (!%p721_p9) }
  0x61   : > { %vm176_vm2 = vcmp.eq.s32.totalorder %v170_v4, %v175_v10  ;;  %vm177_vm3 = vcmp.eq.s32.totalorder %v171_v7, %v175_v10  ;;  %vm183_vm4 = vcmp.eq.s32.totalorder %v170_v4, %v182_v11  ;;  %vm184_vm5 = vcmp.eq.s32.totalorder %v171_v7, %v182_v11  ;;  %v463_v59 = vld [vmem:[#allocation6 + $0x98] sm:$0xff] (!%p721_p9)  ;;  %v464_v61 = vld [vmem:[#allocation6 + $0xa0] sm:$0xff] (!%p721_p9)  ;;  %v465_v62 = vld [vmem:[#allocation6 + $0xa8] sm:$0xff] (!%p721_p9) }
  0x62   : > { %vm185_vm6 = vmor %vm176_vm2, %vm183_vm4  ;;  %vm295_vm13 = vcmp.eq.s32.totalorder %v170_v4, %v294_v29  ;;  %v899_v57 = vpack.c.bf16 (!%p721_p9), %v461_v56, %v460_v55  ;;  %v902_v60 = vpack.c.bf16 (!%p721_p9), %v463_v59, %v462_v58  ;;  %v905_v63 = vpack.c.bf16 (!%p721_p9), %v465_v62, %v464_v61  ;;  %v466_v0 = vld [vmem:[#allocation6 + $0xb0] sm:$0xff] (!%p721_p9)  ;;  %v467_v1 = vld [vmem:[#allocation6 + $0xb8] sm:$0xff] (!%p721_p9) }
  0x63   : > { %vm186_vm7 = vmor %vm177_vm3, %vm184_vm5  ;;  %v908_v2 = vpack.c.bf16 (!%p721_p9), %v467_v1, %v466_v0  ;;  %v546_v3 = vld [vmem:[#allocation6 + $0xe0] sm:$0xff] (!%p721_p9)  ;;  %v547_v4 = vld [vmem:[#allocation6 + $0xe8] sm:$0xff] (!%p721_p9) }
  0x64   : > { %vm878_vm8 = vmpackc.low %vm186_vm7, %vm185_vm6  ;;  %v548_v5 = vld [vmem:[#allocation6 + $0xf0] sm:$0xff] (!%p721_p9)  ;;  %v549_v7 = vld [vmem:[#allocation6 + $0xf8] sm:$0xff] (!%p721_p9) }
  0x65   : > { %879 = vmatpush3.bf16.msk.msra.mxu0 %vm878_vm8, %v1138_v12  ;;  %v914_v8 = vpack.c.bf16 (!%p721_p9), %v549_v7, %v548_v5  ;;  %v550_v9 = vld [vmem:[#allocation6 + $0x100] sm:$0xff] (!%p721_p9)  ;;  %v551_v10 = vld [vmem:[#allocation6 + $0x108] sm:$0xff] (!%p721_p9)  ;;  %v552_v12 = vld [vmem:[#allocation6 + $0x110] sm:$0xff] (!%p721_p9) }
  0x66   : > { %883 = vmatprep.subr.bf16.mxu0 (!%p721_p9), %v1140_v38  ;;  %v917_v11 = vpack.c.bf16 (!%p721_p9), %v551_v10, %v550_v9  ;;  %v561_v27 = vld [vmem:[#allocation6 + $0x158] sm:$0xff] (!%p721_p9)  ;;  %v723_v29 = vld [vmem:[#allocation6 + $0xc0] ss:$0 sm:$0xff] (!%p721_p9) }
  0x68   : > { %781 = vmatmul.mubr.msk.f32.vlgmr.msra.gmra.mrb[0].mxu0 %vm192_vm9, %v189_v13  ;;  %v553_v13 = vld [vmem:[#allocation6 + $0x118] sm:$0xff] (!%p721_p9) }
  0x69   : > { %783 = vmatprep.mubr.msk.f32.mxu0 %vm1136_vm1, %v1137_v6  ;;  %885 = vmatpush3.bf16.msra.mxu0 (!%p721_p9), %v884_v39 }
  0x6a   : > { %802 = vmatprep.subr.mxu0 (!%p721_p9), %v1142_v40 }
  0x6c   : > { %784 = vmatmul.mubr.msk.f32.gmra.mrb[2].mxu0 %vm192_vm9, %v190_v14  ;;  %v920_v14 = vpack.c.bf16 (!%p721_p9), %v553_v13, %v552_v12 }
  0x6d   : > { %786 = vmatprep.mubr.msk.f32.mxu0 %vm1136_vm1, %v1137_v6  ;;  %803 = vmatpush3.msra.mxu0 (!%p721_p9), %v378_v46 }
  0x6e   : > { %910 = vmatprep.subr.bf16.mxu0 (!%p721_p9), %v1140_v38 }
  0x70   : > { %787 = vmatmul.mubr.msk.f32.gmra.mrb[4].mxu0 %vm192_vm9, %v191_v15  ;;  %v554_v15 = vld [vmem:[#allocation6 + $0x120] sm:$0xff] (!%p721_p9) }
  0x71   : > { %804 = vmatprep.mubr.msk.f32.mxu0 (!%p721_p9), %vm1141_vm15, %v1142_v40 }
 0x13b   : > { %v268_v16 = vpop.f32.mrb[0].mxu0 }
 0x13c   : > { %v782_v17 = vpop.f32.mrb[1].mxu0  ;;  %v285_v18 = vmul.f32 0.01, %v268_v16  ;;  %vm282_vm10 = vcmp.gt.f32.partialorder %v268_v16, 0.0 }
 0x13e   : > { %v288_v22 = vsel %vm282_vm10, %v268_v16, %v285_v18  ;;  %v555_v16 = vld [vmem:[#allocation6 + $0x128] sm:$0xff] (!%p721_p9)  ;;  %v556_v18 = vld [vmem:[#allocation6 + $0x130] sm:$0xff] (!%p721_p9) }
 0x13f   : > { %v273_v19 = vpop.f32.mrb[2].mxu0  ;;  %v923_v17 = vpack.c.bf16 (!%p721_p9), %v555_v16, %v554_v15 }
 0x140   : > { %vm283_vm11 = vcmp.gt.f32.partialorder %v273_v19, 0.0  ;;  %v286_v20 = vmul.f32 0.01, %v273_v19  ;;  %v785_v21 = vpop.f32.mrb[3].mxu0 }
 0x141   : > { %v558_v21 = vld [vmem:[#allocation6 + $0x140] sm:$0xff] (!%p721_p9) }
 0x142   : > { %v289_v23 = vsel %vm283_vm11, %v273_v19, %v286_v20  ;;  %v557_v19 = vld [vmem:[#allocation6 + $0x138] sm:$0xff] (!%p721_p9) }
 0x143   : > { %v881_v24 = vpack.c.bf16 %v289_v23, %v288_v22  ;;  %v278_v25 = vpop.f32.mrb[4].mxu0  ;;  %v926_v20 = vpack.c.bf16 (!%p721_p9), %v557_v19, %v556_v18  ;;  %v559_v22 = vld [vmem:[#allocation6 + $0x148] sm:$0xff] (!%p721_p9) }
 0x144   : > { %v788_v26 = vpop.f32.mrb[5].mxu0  ;;  %v287_v28 = vmul.f32 0.01, %v278_v25  ;;  %vm284_vm12 = vcmp.gt.f32.partialorder %v278_v25, 0.0  ;;  %v929_v23 = vpack.c.bf16 (!%p721_p9), %v559_v22, %v558_v21 }
 0x145   : > { %882 = vmatpush3.bf16.xpose.msra.mxu1 %v881_v24  ;;  %v560_v26 = vld [vmem:[#allocation6 + $0x150] sm:$0xff] (!%p721_p9) }
 0x146   : > { %793 = vmatprep.subr.mxu1 %v1137_v6  ;;  %v290_v30 = vsel %vm284_vm12, %v278_v25, %v287_v28  ;;  %v911_v6 = vpack.c.bf16 (!%p721_p9), %v547_v4, %v546_v3  ;;  %v932_v28 = vpack.c.bf16 (!%p721_p9), %v561_v27, %v560_v26 }
 0x14d   : > { %794 = vmatpush3.xpose.msra.mxu1 %v290_v30 }
 0x14e   : > { %886 = vmatprep.subr.bf16.mxu1 (!%p721_p9), %v1140_v38 }
 0x150   : > { %796 = vmatmul.mubr.msk.f32.vlgmr.msra.gmra.mrb[0].mxu1 %vm295_vm13, %v1139_v31 }
 0x151   : > { %839 = vmatprep.mubr.msk.f32.mxu1 (!%p721_p9), %vm1141_vm15, %v1142_v40  ;;  %888 = vmatpush3.bf16.msra.mxu1 (!%p721_p9), %v887_v43 }
 0x152   : > { %889 = vmatprep.subr.bf16.mxu1 (!%p721_p9), %v1140_v38 }
 0x155   : > { %891 = vmatpush3.bf16.msra.mxu1 (!%p721_p9), %v890_v47 }
 0x156   : > { %892 = vmatprep.subr.bf16.mxu1 (!%p721_p9), %v1140_v38 }
 0x159   : > { %894 = vmatpush3.bf16.msra.mxu1 (!%p721_p9), %v893_v51 }
 0x15a   : > { %895 = vmatprep.subr.bf16.mxu1 (!%p721_p9), %v1140_v38 }
 0x15d   : > { %897 = vmatpush3.bf16.msra.mxu1 (!%p721_p9), %v896_v54 }
 0x15e   : > { %898 = vmatprep.subr.bf16.mxu1 (!%p721_p9), %v1140_v38 }
 0x161   : > { %900 = vmatpush3.bf16.msra.mxu1 (!%p721_p9), %v899_v57 }
 0x162   : > { %901 = vmatprep.subr.bf16.mxu1 (!%p721_p9), %v1140_v38 }
 0x165   : > { %903 = vmatpush3.bf16.msra.mxu1 (!%p721_p9), %v902_v60 }
 0x166   : > { %904 = vmatprep.subr.bf16.mxu1 (!%p721_p9), %v1140_v38 }
 0x169   : > { %906 = vmatpush3.bf16.msra.mxu1 (!%p721_p9), %v905_v63 }
 0x16a   : > { %907 = vmatprep.subr.bf16.mxu1 (!%p721_p9), %v1140_v38 }
 0x16d   : > { %909 = vmatpush3.bf16.msra.mxu1 (!%p721_p9), %v908_v2 }
 0x220   : > { %374 = sbr.rel (%p721_p9) target bundleno = 1202 (0x4b2), region = 44 }
 0x223   : > { %v364_v33 = vpop.f32.mrb[0].mxu1 }
 0x224   : > { %v368_v34 = vadd.f32 %v364_v33, %v297_v32  ;;  %v797_v35 = vpop.f32.mrb[1].mxu1 }
 0x225   : > { %v724_v35 = vld [vmem:[#allocation6 + $0x160] ss:$0 sm:$0xff] (!%p721_p9) }
 0x226   : > { %370 = vst.msk [vmem:[#allocation2] sm:$0xff] %vm369_vm14, %v368_v34 }
 0x22d   : > { %v375_v48 = vld [vmem:[#allocation2] sm:$0xff] }
 0x22e   : > { %805 = vmatmul.mubr.msk.f32.vlgmr.msra.gmra.mrb[0].mxu0 %vm369_vm14, %v375_v48 }
 0x22f   : > { %874 = vmatprep.mubr.msk.f32.mxu0 %vm1141_vm15, %v1142_v40  ;;  %912 = vmatpush3.bf16.msra.mxu0 %v911_v6 }
 0x230   : > { %913 = vmatprep.subr.bf16.mxu0 %v1140_v38 }
 0x233   : > { %915 = vmatpush3.bf16.msra.mxu0 %v914_v8 }
 0x234   : > { %916 = vmatprep.subr.bf16.mxu0 %v1140_v38 }
 0x237   : > { %918 = vmatpush3.bf16.msra.mxu0 %v917_v11 }
 0x238   : > { %919 = vmatprep.subr.bf16.mxu0 %v1140_v38 }
 0x23b   : > { %921 = vmatpush3.bf16.msra.mxu0 %v920_v14 }
 0x23c   : > { %922 = vmatprep.subr.bf16.mxu0 %v1140_v38 }
 0x23f   : > { %924 = vmatpush3.bf16.msra.mxu0 %v923_v17 }
 0x240   : > { %925 = vmatprep.subr.bf16.mxu0 %v1140_v38 }
 0x243   : > { %927 = vmatpush3.bf16.msra.mxu0 %v926_v20 }
 0x244   : > { %928 = vmatprep.subr.bf16.mxu0 %v1140_v38 }
 0x247   : > { %930 = vmatpush3.bf16.msra.mxu0 %v929_v23 }
 0x248   : > { %931 = vmatprep.subr.bf16.mxu0 %v1140_v38 }
 0x24b   : > { %933 = vmatpush3.bf16.msra.mxu0 %v932_v28 }
 0x301   : > { %v448_v24 = vpop.f32.mrb[0].mxu0 }
 0x302   : > { %v806_v25 = vpop.f32.mrb[1].mxu0  ;;  %840 = vmatmul.mubr.f32.vlgmr.msra.gmra.mrb[0].mxu1 %v448_v24 }
 0x3d5   : > { %v539_v30 = vpop.f32.mrb[0].mxu1 }
 0x3d6   : > { %v540_v31 = vadd.f32 %v723_v29, %v539_v30  ;;  %v841_v32 = vpop.f32.mrb[1].mxu1 }
 0x3d8   : > { %vm543_vm0 = vcmp.gt.f32.partialorder %v540_v31, 0.0  ;;  %v544_v33 = vmul.f32 0.01, %v540_v31 }
 0x3da   : > { %v545_v34 = vsel %vm543_vm0, %v540_v31, %v544_v33 }
 0x3db   : > { %875 = vmatmul.mubr.f32.vlgmr.msra.gmra.mrb[2].mxu0 %v545_v34 }
 0x4ae   : > { %v633_v36 = vpop.f32.mrb[2].mxu0 }
 0x4af   : > { %v634_v37 = vadd.f32 %v724_v35, %v633_v36  ;;  %v876_v39 = vpop.f32.mrb[3].mxu0 }
 0x4b1   : > { %637 = vst [vmem:[#allocation8] sm:$0xff] %v634_v37 }
 0x4b2 PF: > { %p955_p10 = scmp.eq.s32.totalorder %s1178_s13, 2  ;;  %s1143_s14 = smov [#allocation8]  }
 0x4b3   : > { %s645_s15 = sshll.u32 %s1143_s14, 4  ;;  %s646_s15 = int_to_ptr.vmem [resolvable:$true] %s645_s15 }
 0x4b4   : > { %s1060_s16 = scalar_lea.vmem %s646_s15, 128  ;;  %p1067_p8 = scmp.lt.s32.totalorder %s646_s15, %s646_s15 }
 0x4b5   : > { %p1061_p1 = scmp.ne.s32.totalorder %s646_s15, %s1060_s16  ;;  %p1068_p12 = scmp.lt.s32.totalorder %s1060_s16, %s1060_s16 }
 0x4b7   : > { %p1062_p4 = pnand %p1061_p1, %p955_p10  ;;  %p1069_p0 = por %p1068_p12, %p1067_p8 }
 0x4b9   : > { %p1063_p5 = pneg %p1062_p4 }
 0x4bb   : > { %p1070_p2 = pnand %p1069_p0, %p1063_p5 }
 0x4bd   : > { %1073 = shalt.err (!%p1070_p2)
}
 0x4be   : > { %s1074_s17 = scalar_lea.hbm %s1348_s2, 128 }
 0x4bf   : > { %p1075_p13 = scmp.ne.s32.totalorder %s1348_s2, %s1074_s17  ;;  %p1080_p7 = scmp.lt.u32.totalorder %s1074_s17, %s1348_s2 }
 0x4c1   : > { %p1076_p11 = pnand %p1075_p13, %p955_p10 }
 0x4c3   : > { %p1077_p3 = pneg %p1076_p11 }
 0x4c5   : > { %p1082_p6 = pnand %p1080_p7, %p1077_p3 }
 0x4c7   : > { %1085 = shalt.err (!%p1082_p6)
}
 0x4c8   : > { %941 = dma.vmem_to_hbm [thread:$0]  (%p955_p10), %s646_s15, 128, %s1348_s2, [#allocation5]  }
 0x4c9   : > { %1111 = dma.done.wait (%p955_p10), [#allocation5], 128  }
 0x4ca   : > { %1113 = vsyncadd (%p955_p10), [#allocation5], 4294967168 }
 0x4cb PF: > { %p14_p9 = scmp.ge.s32.totalorder %s1204_s19, 5   ;;  %s1361_s9 = smov %s1120_s10 }
 0x4cc   : > { %s1362_s10 = smov %s1124_s11  ;;  %s1363_s11 = smov %s1230_s6 }
 0x4cd   : > { %s1364_s12 = smov %s1204_s19  ;;  %16 = sbr.rel (!%p14_p9) target bundleno = 5 (0x5), region = 77 }
 0x4d4   :  { %658 = vsyncpa [#allocation4], 1 }
 0x4d5   :  { %660 = vsyncpa [#allocation4 + $0x1], 1 }
 0x4d6   :  { %661 = vsyncpa [#allocation7], 1 }
 0x4d7   :  { %662 = vsyncpa [#allocation5], 1 }
 0x4d8   :  { %664 = vsyncpa [#allocation5 + $0x1], 1 }

</bundles_post_ra>
